<compile_context>
chip_gen: v5e
topology: v5e:2x2
jax: 0.10.0
libtpu: 0.0.40
codegen_flags: <defaults>
</compile_context>

<pallas_src>
import functools

import jax
import jax.numpy as jnp
from jax.experimental import pallas as pl
from jax.experimental.pallas import tpu as pltpu


# --- budgets (safe on v5e / v6e / v7x) -------------------------------------
_MAX_BLOCK_BYTES = 4 * 1024 * 1024      # per-tile bytes; pass 2 double-buffers
                                        # x-in + y-out => ~16 MiB of pipeline bufs
_VMEM_LIMIT_BYTES = 48 * 1024 * 1024    # raise default scoped VMEM limit
_MAX_STATS_LANES = 32 * 128             # bound the in-kernel 128-lane group unroll
_FUSED_ELEMS_LIMIT = 1024 * 1024        # <= ~4 MiB as f32 -> fused single kernel


# ---------------------------------------------------------------------------
# Kernels
# ---------------------------------------------------------------------------

def _make_stats_kernel(c, tile_hw, hw, needs_mask):
    """Per-(batch, channel) partial sum / sum-of-squares.

    x_ref:              (C, tile_hw)  one (batch, hw-tile) slab
    sum_ref, sumsq_ref: (C, 128)      resident f32 accumulators (lane-dense)
    """
    n_groups = tile_hw // 128
    rem = tile_hw % 128          # nonzero only when tile_hw == hw (full block)

    def kernel(x_ref, sum_ref, sumsq_ref):
        t = pl.program_id(1)

        @pl.when(t == 0)
        def _init():
            sum_ref[...] = jnp.zeros_like(sum_ref)
            sumsq_ref[...] = jnp.zeros_like(sumsq_ref)

        if needs_mask:
            lane = jax.lax.broadcasted_iota(jnp.int32, (c, 128), 1)
            base = t * tile_hw

        # Lane-dense 128-wide groups accumulated with VPU adds only.
        for g in range(n_groups):
            xg = x_ref[:, g * 128:(g + 1) * 128].astype(jnp.float32)
            if needs_mask:
                xg = jnp.where(base + g * 128 + lane < hw, xg, 0.0)
            sum_ref[...] += xg
            sumsq_ref[...] += xg * xg

        if rem:
            # Only reachable when the whole spatial dim is one (possibly
            # non-128-multiple) block, so no grid-boundary masking is needed.
            xr = x_ref[:, n_groups * 128:].astype(jnp.float32)
            xr_s = jnp.sum(xr, axis=-1, keepdims=True)
            xr_q = jnp.sum(xr * xr, axis=-1, keepdims=True)
            lane0 = jax.lax.broadcasted_iota(jnp.int32, (c, 128), 1) == 0
            sum_ref[...] += jnp.where(lane0, xr_s, 0.0)
            sumsq_ref[...] += jnp.where(lane0, xr_q, 0.0)

    return kernel


def _bn_normalize_kernel(x_ref, scale_ref, shift_ref, y_ref):
    """y = x * scale + shift (per-channel affine); pure element-wise VPU work."""
    x = x_ref[...].astype(jnp.float32)
    y_ref[...] = (x * scale_ref[...] + shift_ref[...]).astype(y_ref.dtype)


def _make_fused_kernel(eps):
    """Single-kernel path for small activations: stats + normalize, x read once."""
    def kernel(x_ref, gamma_ref, beta_ref, y_ref):
        b_n, c, hw = x_ref.shape
        inv_n = 1.0 / float(b_n * hw)
        unroll = b_n <= 8

        def stats_body(b, carry):
            s, ss = carry
            xb = x_ref[b].astype(jnp.float32)                 # (C, HW)
            s = s + jnp.sum(xb, axis=-1, keepdims=True)
            ss = ss + jnp.sum(xb * xb, axis=-1, keepdims=True)
            return s, ss

        zeros = jnp.zeros((c, 1), jnp.float32)
        s, ss = jax.lax.fori_loop(0, b_n, stats_body, (zeros, zeros),
                                  unroll=unroll)

        mean = s * inv_n
        var = jnp.maximum(ss * inv_n - mean * mean, 0.0)      # biased var (torch)
        scale = gamma_ref[...] * jax.lax.rsqrt(var + eps)     # (C, 1)
        shift = beta_ref[...] - mean * scale

        def norm_body(b, carry):
            xb = x_ref[b].astype(jnp.float32)
            y_ref[b] = (xb * scale + shift).astype(y_ref.dtype)
            return carry

        jax.lax.fori_loop(0, b_n, norm_body, 0, unroll=unroll)

    return kernel


# ---------------------------------------------------------------------------
# Wrapper
# ---------------------------------------------------------------------------

def _pick_tile_hw(hw, c, itemsize, max_block_bytes, max_lanes=None):
    """Tile size along H*W: a multiple of 128 (lane-dense), unless the whole
    spatial dim fits in one block (a full-dim block is always legal).  The
    tile need NOT divide hw; the caller uses a cdiv grid + masking."""
    fits_bytes = hw * c * itemsize <= max_block_bytes
    fits_lanes = (max_lanes is None) or (hw <= max_lanes)
    if fits_bytes and fits_lanes:
        return hw
    t = (max_block_bytes // max(c * itemsize, 1)) // 128 * 128
    if max_lanes is not None:
        t = min(t, max_lanes)
    t = max(t, 128)
    if t >= hw:
        return hw
    return t


@functools.partial(jax.jit, static_argnames=("eps", "fused_elems_limit"))
def my_batchnorm2d(x, gamma, beta, eps=1e-5, *,
                   fused_elems_limit=_FUSED_ELEMS_LIMIT):
    """Training-mode BatchNorm2d forward.

    Args:
      x:     (B, C, H, W)
      gamma: (1, C, 1, 1)
      beta:  (1, C, 1, 1)
    Returns:
      (B, C, H, W), same dtype as x.
    """
    B, C, H, W = x.shape
    HW = H * W

    # NCHW -> (B, C, H*W) is a free reshape (contiguous); spatial on lanes.
    x3 = x.reshape(B, C, HW)
    gamma2 = gamma.reshape(C, 1).astype(jnp.float32)
    beta2 = beta.reshape(C, 1).astype(jnp.float32)

    # ---- Fused single-kernel path: 1 HBM read + 1 write of x ---------------
    if B * C * HW <= fused_elems_limit:
        y3 = pl.pallas_call(
            _make_fused_kernel(float(eps)),
            out_shape=jax.ShapeDtypeStruct((B, C, HW), x.dtype),
            compiler_params=pltpu.CompilerParams(
                vmem_limit_bytes=_VMEM_LIMIT_BYTES),
        )(x3, gamma2, beta2)
        return y3.reshape(B, C, H, W)

    # ---- Two-pass streaming path -------------------------------------------
    itemsize = x.dtype.itemsize
    tile_stats = _pick_tile_hw(HW, C, itemsize, _MAX_BLOCK_BYTES, _MAX_STATS_LANES)
    tile_norm = _pick_tile_hw(HW, C, itemsize, _MAX_BLOCK_BYTES)
    t_stats = pl.cdiv(HW, tile_stats)
    t_norm = pl.cdiv(HW, tile_norm)
    needs_mask = (HW % tile_stats) != 0

    x_spec_stats = pl.BlockSpec((None, C, tile_stats), lambda b, t: (b, 0, t))
    x_spec_norm = pl.BlockSpec((None, C, tile_norm), lambda b, t: (b, 0, t))
    acc_spec = pl.BlockSpec((None, C, 128), lambda b, t: (b, 0, 0))
    ch_spec = pl.BlockSpec((C, 1), lambda b, t: (0, 0))

    # Pass 1: per-batch partial stats.  B 'parallel' (megacore on v7x),
    # HW 'arbitrary' (resident per-b accumulator across the reduction axis).
    sum_part, sq_part = pl.pallas_call(
        _make_stats_kernel(C, tile_stats, HW, needs_mask),
        out_shape=(jax.ShapeDtypeStruct((B, C, 128), jnp.float32),
                   jax.ShapeDtypeStruct((B, C, 128), jnp.float32)),
        grid_spec=pltpu.PrefetchScalarGridSpec(
            num_scalar_prefetch=0,
            grid=(B, t_stats),
            in_specs=[x_spec_stats],
            out_specs=(acc_spec, acc_spec)),
        compiler_params=pltpu.CompilerParams(
            dimension_semantics=("parallel", "arbitrary"),
            vmem_limit_bytes=_VMEM_LIMIT_BYTES),
    )(x3)

    # Tiny epilogue (fused under jit): fold partials + affine into scale/shift.
    # One-pass E[x^2]-E[x]^2 in f32; clamp guards tiny negative round-off.
    n_elems = B * HW
    sums = jnp.sum(sum_part, axis=(0, 2))        # (C,)
    sumsqs = jnp.sum(sq_part, axis=(0, 2))       # (C,)
    mean = sums / n_elems
    var = jnp.maximum(sumsqs / n_elems - mean * mean, 0.0)   # biased var (torch)
    inv_std = jax.lax.rsqrt(var + jnp.float32(eps))
    g = gamma2[:, 0]
    scale = (g * inv_std).reshape(C, 1)
    shift = (beta2[:, 0] - mean * g * inv_std).reshape(C, 1)

    # Pass 2: streaming normalize + affine; fully data-parallel.
    y3 = pl.pallas_call(
        _bn_normalize_kernel,
        out_shape=jax.ShapeDtypeStruct((B, C, HW), x.dtype),
        grid_spec=pltpu.PrefetchScalarGridSpec(
            num_scalar_prefetch=0,
            grid=(B, t_norm),
            in_specs=[x_spec_norm, ch_spec, ch_spec],
            out_specs=x_spec_norm),
        compiler_params=pltpu.CompilerParams(
            dimension_semantics=("parallel", "parallel"),
            vmem_limit_bytes=_VMEM_LIMIT_BYTES),
    )(x3, scale, shift)

    return y3.reshape(B, C, H, W)


def _reference_batchnorm2d(x, gamma, beta, eps=1e-5):
    mean = jnp.mean(x, axis=(0, 2, 3), keepdims=True)
    var = jnp.mean((x - mean) ** 2, axis=(0, 2, 3), keepdims=True)
    return gamma * (x - mean) / jnp.sqrt(var + eps) + beta


if __name__ == "__main__":
    key = jax.random.PRNGKey(0)
    kx, kg, kb, kx2, kx3 = jax.random.split(key, 5)

    # 1) Small shape -> fused single-kernel path.
    B, C, H, W = 2, 4, 16, 16
    x = jax.random.normal(kx, (B, C, H, W), dtype=jnp.float32) * 2.0 + 0.5
    gamma = 1.0 + 0.1 * jax.random.normal(kg, (1, C, 1, 1), dtype=jnp.float32)
    beta = 0.1 * jax.random.normal(kb, (1, C, 1, 1), dtype=jnp.float32)
    y = jax.block_until_ready(my_batchnorm2d(x, gamma, beta))
    y_ref = _reference_batchnorm2d(x, gamma, beta)
    assert y.shape == (B, C, H, W)
    assert jnp.allclose(y, y_ref, atol=1e-4, rtol=1e-4), (
        f"fused path mismatch: {float(jnp.max(jnp.abs(y - y_ref)))}")

    # 2) HW not a multiple of 128 and larger than the stats lane cap ->
    #    forces the tiled two-pass path with masked partial stats tiles.
    B2, C2, H2, W2 = 2, 8, 65, 65
    x2 = jax.random.normal(kx2, (B2, C2, H2, W2), dtype=jnp.float32) - 1.5
    gamma2 = jnp.full((1, C2, 1, 1), 1.3, jnp.float32)
    beta2 = jnp.full((1, C2, 1, 1), -0.2, jnp.float32)
    y2 = jax.block_until_ready(
        my_batchnorm2d(x2, gamma2, beta2, fused_elems_limit=0))
    y2_ref = _reference_batchnorm2d(x2, gamma2, beta2)
    assert jnp.allclose(y2, y2_ref, atol=1e-4, rtol=1e-4), (
        f"two-pass (masked) mismatch: {float(jnp.max(jnp.abs(y2 - y2_ref)))}")

    # 3) Tiny spatial dim (< 128 lanes) on the two-pass path -> exercises the
    #    remainder (non-128-multiple full-block) branch of the stats kernel.
    B3, C3, H3, W3 = 2, 8, 9, 9
    x3 = jax.random.normal(kx3, (B3, C3, H3, W3), dtype=jnp.float32) * 0.7 + 2.0
    gamma3 = jnp.ones((1, C3, 1, 1), jnp.float32)
    beta3 = jnp.zeros((1, C3, 1, 1), jnp.float32)
    y3 = jax.block_until_ready(
        my_batchnorm2d(x3, gamma3, beta3, fused_elems_limit=0))
    y3_ref = _reference_batchnorm2d(x3, gamma3, beta3)
    assert jnp.allclose(y3, y3_ref, atol=1e-4, rtol=1e-4), (
        f"two-pass (remainder) mismatch: {float(jnp.max(jnp.abs(y3 - y3_ref)))}")

    print("KERNEL_OK")
</pallas_src>

<mosaic_0001>
module attributes {stable_mosaic.version = 11 : i64} {
  func.func @kernel(%arg0: memref<2x4x256xf32, #tpu.memory_space<vmem>>, %arg1: memref<4x1xf32, #tpu.memory_space<vmem>>, %arg2: memref<4x1xf32, #tpu.memory_space<vmem>>, %arg3: memref<2x4x256xf32, #tpu.memory_space<vmem>>) attributes {dimension_semantics = [], scalar_prefetch = 0 : i64, scratch_operands = 0 : i64, tpu.core_type = #tpu.core_type<tc>} {
    %cst = arith.constant 0.000000e+00 : f32
    %0 = vector.broadcast %cst : f32 to vector<4x1xf32>
    %c0_i32 = arith.constant 0 : i32
    %1 = arith.index_cast %c0_i32 : i32 to index
    %c0 = arith.constant 0 : index
    %c0_0 = arith.constant 0 : index
    %2 = vector.load %arg0[%1, %c0, %c0_0] : memref<2x4x256xf32, #tpu.memory_space<vmem>>, vector<1x4x256xf32>
    %3 = vector.shape_cast %2 : vector<1x4x256xf32> to vector<4x256xf32>
    %cst_1 = arith.constant dense<0.000000e+00> : vector<4xf32>
    %4 = vector.multi_reduction <add>, %3, %cst_1 [1] : vector<4x256xf32> to vector<4xf32>
    %5 = vector.shape_cast %4 : vector<4xf32> to vector<4x1xf32>
    %6 = arith.addf %0, %5 : vector<4x1xf32>
    %7 = arith.mulf %3, %3 : vector<4x256xf32>
    %cst_2 = arith.constant dense<0.000000e+00> : vector<4xf32>
    %8 = vector.multi_reduction <add>, %7, %cst_2 [1] : vector<4x256xf32> to vector<4xf32>
    %9 = vector.shape_cast %8 : vector<4xf32> to vector<4x1xf32>
    %10 = arith.addf %0, %9 : vector<4x1xf32>
    %c1_i32 = arith.constant 1 : i32
    %11 = arith.index_cast %c1_i32 : i32 to index
    %c0_3 = arith.constant 0 : index
    %c0_4 = arith.constant 0 : index
    %12 = vector.load %arg0[%11, %c0_3, %c0_4] : memref<2x4x256xf32, #tpu.memory_space<vmem>>, vector<1x4x256xf32>
    %13 = vector.shape_cast %12 : vector<1x4x256xf32> to vector<4x256xf32>
    %cst_5 = arith.constant dense<0.000000e+00> : vector<4xf32>
    %14 = vector.multi_reduction <add>, %13, %cst_5 [1] : vector<4x256xf32> to vector<4xf32>
    %15 = vector.shape_cast %14 : vector<4xf32> to vector<4x1xf32>
    %16 = arith.addf %6, %15 : vector<4x1xf32>
    %17 = arith.mulf %13, %13 : vector<4x256xf32>
    %cst_6 = arith.constant dense<0.000000e+00> : vector<4xf32>
    %18 = vector.multi_reduction <add>, %17, %cst_6 [1] : vector<4x256xf32> to vector<4xf32>
    %19 = vector.shape_cast %18 : vector<4xf32> to vector<4x1xf32>
    %20 = arith.addf %10, %19 : vector<4x1xf32>
    %c2_i32 = arith.constant 2 : i32
    %cst_7 = arith.constant 0.001953125 : f32
    %21 = vector.broadcast %cst_7 : f32 to vector<4x1xf32>
    %22 = arith.mulf %16, %21 : vector<4x1xf32>
    %cst_8 = arith.constant 0.001953125 : f32
    %23 = vector.broadcast %cst_8 : f32 to vector<4x1xf32>
    %24 = arith.mulf %20, %23 : vector<4x1xf32>
    %25 = arith.mulf %22, %22 : vector<4x1xf32>
    %26 = arith.subf %24, %25 : vector<4x1xf32>
    %cst_9 = arith.constant 0.000000e+00 : f32
    %27 = vector.broadcast %cst_9 : f32 to vector<4x1xf32>
    %28 = arith.maximumf %26, %27 : vector<4x1xf32>
    %c0_10 = arith.constant 0 : index
    %c0_11 = arith.constant 0 : index
    %29 = vector.load %arg1[%c0_10, %c0_11] : memref<4x1xf32, #tpu.memory_space<vmem>>, vector<4x1xf32>
    %cst_12 = arith.constant 9.99999974E-6 : f32
    %30 = vector.broadcast %cst_12 : f32 to vector<4x1xf32>
    %31 = arith.addf %28, %30 : vector<4x1xf32>
    %32 = math.rsqrt %31 : vector<4x1xf32>
    %33 = arith.mulf %29, %32 : vector<4x1xf32>
    %c0_13 = arith.constant 0 : index
    %c0_14 = arith.constant 0 : index
    %34 = vector.load %arg2[%c0_13, %c0_14] : memref<4x1xf32, #tpu.memory_space<vmem>>, vector<4x1xf32>
    %35 = arith.mulf %22, %33 : vector<4x1xf32>
    %36 = arith.subf %34, %35 : vector<4x1xf32>
    %c0_i32_15 = arith.constant 0 : i32
    %37 = arith.index_cast %c0_i32_15 : i32 to index
    %c0_16 = arith.constant 0 : index
    %c0_17 = arith.constant 0 : index
    %38 = vector.load %arg0[%37, %c0_16, %c0_17] : memref<2x4x256xf32, #tpu.memory_space<vmem>>, vector<1x4x256xf32>
    %39 = vector.shape_cast %38 : vector<1x4x256xf32> to vector<4x256xf32>
    %40 = vector.broadcast %33 : vector<4x1xf32> to vector<4x256xf32>
    %41 = arith.mulf %39, %40 : vector<4x256xf32>
    %42 = vector.broadcast %36 : vector<4x1xf32> to vector<4x256xf32>
    %43 = arith.addf %41, %42 : vector<4x256xf32>
    %44 = arith.index_cast %c0_i32_15 : i32 to index
    %c0_18 = arith.constant 0 : index
    %c0_19 = arith.constant 0 : index
    %45 = vector.load %arg3[%44, %c0_18, %c0_19] : memref<2x4x256xf32, #tpu.memory_space<vmem>>, vector<1x4x256xf32>
    %46 = vector.shape_cast %45 : vector<1x4x256xf32> to vector<4x256xf32>
    %47 = vector.shape_cast %43 : vector<4x256xf32> to vector<1x4x256xf32>
    tpu.vector_store %arg3[%44, %c0_18, %c0_19], %47 {strides = array<i32>} : memref<2x4x256xf32, #tpu.memory_space<vmem>>, vector<1x4x256xf32>,
    %c1_i32_20 = arith.constant 1 : i32
    %48 = arith.index_cast %c1_i32_20 : i32 to index
    %c0_21 = arith.constant 0 : index
    %c0_22 = arith.constant 0 : index
    %49 = vector.load %arg0[%48, %c0_21, %c0_22] : memref<2x4x256xf32, #tpu.memory_space<vmem>>, vector<1x4x256xf32>
    %50 = vector.shape_cast %49 : vector<1x4x256xf32> to vector<4x256xf32>
    %51 = vector.broadcast %33 : vector<4x1xf32> to vector<4x256xf32>
    %52 = arith.mulf %50, %51 : vector<4x256xf32>
    %53 = vector.broadcast %36 : vector<4x1xf32> to vector<4x256xf32>
    %54 = arith.addf %52, %53 : vector<4x256xf32>
    %55 = arith.index_cast %c1_i32_20 : i32 to index
    %c0_23 = arith.constant 0 : index
    %c0_24 = arith.constant 0 : index
    %56 = vector.load %arg3[%55, %c0_23, %c0_24] : memref<2x4x256xf32, #tpu.memory_space<vmem>>, vector<1x4x256xf32>
    %57 = vector.shape_cast %56 : vector<1x4x256xf32> to vector<4x256xf32>
    %58 = vector.shape_cast %54 : vector<4x256xf32> to vector<1x4x256xf32>
    tpu.vector_store %arg3[%55, %c0_23, %c0_24], %58 {strides = array<i32>} : memref<2x4x256xf32, #tpu.memory_space<vmem>>, vector<1x4x256xf32>,
    %c2_i32_25 = arith.constant 2 : i32
    return
  }
}

</mosaic_0001>

<bundles_post_ra>
// kernel: my_batchnorm2d.1
= control target key start
LH: loop header
LB: loop body
LE: loop exit
PB: predicated region body
PF: predicated region fallthrough
CT: control target
= control target key end

     0   :  { %vm21_vm0 = vcmask 1043456   ;;  %v128_v25 = vmov 0   ;;  %v129_v49 = vmov 839922192   ;;  %s188_s0 = inlined_call_operand.vmem [shape: f32[2,4,256], index: 0, kind: input, shape index: {}]   ;;  %s189_s1 = inlined_call_operand.vmem [shape: f32[4,1], index: 1, kind: input, shape index: {}]   ;;  %s190_s2 = inlined_call_operand.vmem [shape: f32[4,1], index: 2, kind: input, shape index: {}]   ;;  %s191_s3 = inlined_call_operand.vmem [shape: f32[2,4,256], index: 3, kind: output, shape index: {}]  }
   0x1   :  { %v153_v0 = vld [vmem:[%s188_s0] sm:$0xff]  ;;  %v163_v7 = vld [vmem:[%s188_s0 + $0x8] sm:$0xff]  ;;  %124 = vset.pattern.permute.xlu2 %v128_v25  ;;  %125 = vset.pattern.permute.xlu0 %v128_v25  ;;  %v94_v50 = vunpack.c.l.s4 %v129_v49 }
   0x2   :  { %16 = vst [vmem:[#allocation1] ss:$2 sm:$0xff] %v153_v0  ;;  %v28_v1 = vmul.f32 %v153_v0, %v153_v0  ;;  %v55_v13 = vmul.f32 %v163_v7, %v163_v7  ;;  %v73_v42 = vld [vmem:[%s189_s1] sm:$0xf] }
   0x3   :  { %v86_v47 = vld [vmem:[%s190_s2] sm:$0xf]  ;;  %v95_v52 = vunpack.c.0.s8 %v94_v50 }
   0x9   :  { %v17_v2 = vld.sshfl [vmem:[#allocation1] sm:$0xff pattern:$0x75316420]  ;;  %v18_v3 = vld.sshfl [vmem:[#allocation1 + $0x8] sm:$0xff pattern:$0x75316420] }
   0xa   :  { %v22_v4 = vsel %vm21_vm0, %v17_v2, 0.0  ;;  %v23_v5 = vsel %vm21_vm0, %v18_v3, 0.0  ;;  %30 = vst [vmem:[#allocation1] ss:$2 sm:$0xff] %v28_v1 }
   0xb   :  { %v24_v6 = vadd.f32 %v23_v5, %v22_v4 }
   0xd   :  { %25 = vadd.xlane.f32.xlu0 %v24_v6 }
  0x11   :  { %v31_v8 = vld.sshfl [vmem:[#allocation1] sm:$0xff pattern:$0x75316420]  ;;  %v32_v9 = vld.sshfl [vmem:[#allocation1 + $0x8] sm:$0xff pattern:$0x75316420] }
  0x12   :  { %v35_v10 = vsel %vm21_vm0, %v31_v8, 0.0  ;;  %v36_v11 = vsel %vm21_vm0, %v32_v9, 0.0  ;;  %44 = vst [vmem:[#allocation1] ss:$2 sm:$0xff] %v163_v7 }
  0x13   :  { %v37_v12 = vadd.f32 %v36_v11, %v35_v10 }
  0x15   :  { %38 = vadd.xlane.f32.xlu1 %v37_v12 }
  0x19   :  { %v45_v14 = vld.sshfl [vmem:[#allocation1] sm:$0xff pattern:$0x75316420]  ;;  %v46_v15 = vld.sshfl [vmem:[#allocation1 + $0x8] sm:$0xff pattern:$0x75316420] }
  0x1a   :  { %v49_v16 = vsel %vm21_vm0, %v45_v14, 0.0  ;;  %v50_v17 = vsel %vm21_vm0, %v46_v15, 0.0  ;;  %57 = vst [vmem:[#allocation1] ss:$2 sm:$0xff] %v55_v13 }
  0x1b   :  { %v51_v18 = vadd.f32 %v50_v17, %v49_v16 }
  0x1d   :  { %52 = vadd.xlane.f32.xlu0 %v51_v18 }
  0x21   :  { %v58_v19 = vld.sshfl [vmem:[#allocation1] sm:$0xff pattern:$0x75316420]  ;;  %v59_v20 = vld.sshfl [vmem:[#allocation1 + $0x8] sm:$0xff pattern:$0x75316420] }
  0x22   :  { %v62_v21 = vsel %vm21_vm0, %v58_v19, 0.0  ;;  %v63_v22 = vsel %vm21_vm0, %v59_v20, 0.0 }
  0x23   :  { %v64_v23 = vadd.f32 %v63_v22, %v62_v21 }
  0x25   :  { %65 = vadd.xlane.f32.xlu1 %v64_v23 }
  0x80   :  { %v26_v24 = vpop.xlane.xlu0 %25 }
  0x88   :  { %v39_v26 = vpop.xlane.xlu1 %38 }
  0x90   :  { %v53_v27 = vpop.xlane.xlu0 %52 }
  0x91   :  { %v54_v28 = vadd.f32 %v53_v27, %v26_v24 }
  0x93   :  { %v68_v29 = vmul.f32 0.001953125, %v54_v28 }
  0x95   :  { %v70_v32 = vmul.f32 %v68_v29, %v68_v29 }
  0x98   :  { %v66_v30 = vpop.xlane.xlu1 %65 }
  0x99   :  { %v67_v31 = vadd.f32 %v66_v30, %v39_v26 }
  0x9b   :  { %v69_v33 = vmul.f32 0.001953125, %v67_v31 }
  0x9d   :  { %v71_v34 = vsub.f32 %v69_v33, %v70_v32 }
  0x9f   :  { %v72_v35 = vmax.f32 %v71_v34, 0.0 }
  0xa1   :  { %v74_v36 = vadd.f32 1e-05, %v72_v35 }
  0xa3   :  { %126 = vrsqrt.f32 %v74_v36  ;;  %vm81_vm2 = vweird.f32 %v74_v36 }
  0xa9   :  { %v127_v37 = vpop.eup %126 }
  0xaa   :  { %v76_v38 = vmul.f32 %v127_v37, %v74_v36  ;;  %vm82_vm1 = vweird.f32 %v127_v37 }
  0xab   :  { %vm83_vm3 = vmor %vm81_vm2, %vm82_vm1 }
  0xac   :  { %v77_v39 = vmul.f32 %v127_v37, %v76_v38 }
  0xae   :  { %v78_v40 = vmul.f32 0.5, %v77_v39 }
  0xb0   :  { %v79_v41 = vsub.f32 1.5, %v78_v40 }
  0xb2   :  { %v80_v43 = vmul.f32 %v127_v37, %v79_v41 }
  0xb4   :  { %v84_v44 = vsel %vm83_vm3, %v127_v37, %v80_v43 }
  0xb5   :  { %v85_v45 = vmul.f32 %v84_v44, %v73_v42 }
  0xb7   :  { %91 = vperm.xlu2 %124, %v85_v45   ;;  %v87_v46 = vmul.f32 %v85_v45, %v68_v29 }
  0xb9   :  { %v88_v48 = vsub.f32 %v86_v47, %v87_v46 }
  0xbf   :  { %101 = vperm.xlu2 %124, %v88_v48  }
 0x111   :  { %v92_v51 = vpop.permute.xlu2 %91 }
 0x112   :  { %v96_v53 = vperm.slane %v92_v51, %v95_v52 }
 0x114   :  { %v98_v55 = vmul.f32 %v96_v53, %v153_v0  ;;  %v111_v56 = vmul.f32 %v163_v7, %v96_v53 }
 0x119   :  { %v102_v54 = vpop.permute.xlu2 %101 }
 0x11a   :  { %v106_v57 = vperm.slane %v102_v54, %v95_v52 }
 0x11c   :  { %v108_v58 = vadd.f32 %v106_v57, %v98_v55  ;;  %v112_v59 = vadd.f32 %v111_v56, %v106_v57 }
 0x11e   :  { %109 = vst [vmem:[%s191_s3] sm:$0xff] %v108_v58 }
 0x11f   :  { %121 = vst [vmem:[%s191_s3 + $0x8] sm:$0xff] %v112_v59 }

</bundles_post_ra>
